<compile_context>
chip_gen: v5e
topology: v5e:2x2
jax: 0.10.0
libtpu: 0.0.40
codegen_flags: <defaults>
</compile_context>

<pallas_src>
import jax
import jax.numpy as jnp
from jax import lax
from jax.experimental import pallas as pl
from jax.experimental.pallas import tpu as pltpu


# ----------------------------------------------------------------------------
# Kernel 1: h1 = relu(rep @ W1^T + b1), tiled over (H, K) with K-reduction.
# ----------------------------------------------------------------------------
def _fc1_kernel(rep_ref, w1_ref, b1_ref, h1_ref, acc_ref):
    k = pl.program_id(1)

    @pl.when(k == 0)
    def _():
        acc_ref[...] = jnp.zeros_like(acc_ref)

    # rep block: (B_pad, tk); w1 block: (tn, tk)  -> contract over tk.
    acc_ref[...] += lax.dot_general(
        rep_ref[...], w1_ref[...],
        dimension_numbers=(((1,), (1,)), ((), ())),
        preferred_element_type=jnp.float32)

    @pl.when(k == pl.num_programs(1) - 1)
    def _():
        h1_ref[...] = jnp.maximum(acc_ref[...] + b1_ref[...], 0.0
                                  ).astype(h1_ref.dtype)


# ----------------------------------------------------------------------------
# Kernel 2: tiny tail — h2 = relu(h1 @ W2^T + b2); out = [h2|fp] @ W3^T + b3.
# N == 1, so the final projection is a VPU reduction (no N=1 MXU matmul).
# ----------------------------------------------------------------------------
def _tail_kernel(h1_ref, fp_ref, w2_ref, b2_ref, w3a_ref, w3b_ref, b3_ref,
                 out_ref):
    h2 = lax.dot_general(
        h1_ref[...], w2_ref[...],
        dimension_numbers=(((1,), (1,)), ((), ())),
        preferred_element_type=jnp.float32)
    h2 = jnp.maximum(h2 + b2_ref[...], 0.0)
    # dropout: identity at inference (eval mode)
    y = (jnp.sum(h2 * w3a_ref[...], axis=-1, keepdims=True)
         + jnp.sum(fp_ref[...] * w3b_ref[...], axis=-1, keepdims=True)
         + b3_ref[...])
    out_ref[...] = y.astype(out_ref.dtype)


def _pick_tile(dim, target, align):
    """Largest `align`-multiple divisor of `dim` not exceeding `target`."""
    if dim <= target:
        return dim
    t = (target // align) * align
    while t >= align:
        if dim % t == 0:
            return t
        t -= align
    return dim  # fall back to full extent (always a legal block)


def prepare_params(params, compute_dtype=jnp.bfloat16):
    """One-time (load-time) cast of the large fc_protein1 weight.

    Done outside the per-call path so the full W1 is never re-read/re-written
    (cast or transposed) on every forward.
    """
    p = dict(params)
    p["w1"] = params["w1"].astype(compute_dtype)
    return p


def esm2_regressor_head(last_hidden_state, morgan_fingerprint, params,
                        *, tk_target=2048, tn_target=512):
    """last_hidden_state: (B, S, E); morgan_fingerprint: (B, F)."""
    B, S, E = last_hidden_state.shape
    K = S * E
    w1, b1 = params["w1"], params["b1"]          # w1: (H, K)  (nn.Linear layout)
    w2, b2 = params["w2"], params["b2"]          # w2: (H2, H)
    w3, b3 = params["w3"], params["b3"]          # w3: (1, H2 + F)
    H = w1.shape[0]
    H2 = w2.shape[0]
    F = morgan_fingerprint.shape[1]

    # Pad batch to the f32 sublane (8) to avoid masked loads/stores.
    B_pad = max(8, ((B + 7) // 8) * 8)
    rep = last_hidden_state.reshape(B, K).astype(w1.dtype)
    fp = morgan_fingerprint.astype(jnp.float32)
    if B_pad != B:
        rep = jnp.pad(rep, ((0, B_pad - B), (0, 0)))
        fp = jnp.pad(fp, ((0, B_pad - B), (0, 0)))

    tk = _pick_tile(K, tk_target, 256)   # 256-aligned (also 128-aligned for v5e)
    tn = _pick_tile(H, tn_target, 256)
    grid = (H // tn, K // tk)

    itemsize = jnp.dtype(w1.dtype).itemsize
    # Double-buffered inputs/outputs + f32 accumulator, with 2x headroom.
    vmem_needed = (2 * (tn * tk + B_pad * tk) * itemsize
                   + 2 * (B_pad * tn + tn) * 4
                   + B_pad * tn * 4)
    vmem_limit = int(min(48 * 1024 * 1024,
                         max(2 * vmem_needed, 16 * 1024 * 1024)))

    cost = pl.CostEstimate(
        flops=2 * B_pad * K * H,
        transcendentals=0,
        bytes_accessed=(K * H + B_pad * K) * itemsize + B_pad * H * 4)

    h1 = pl.pallas_call(
        _fc1_kernel,
        out_shape=jax.ShapeDtypeStruct((B_pad, H), jnp.float32),
        grid_spec=pltpu.PrefetchScalarGridSpec(
            num_scalar_prefetch=0,
            grid=grid,
            in_specs=[
                pl.BlockSpec((B_pad, tk), lambda i, k: (0, k)),   # rep
                pl.BlockSpec((tn, tk), lambda i, k: (i, k)),      # W1 (H, K) streamed
                pl.BlockSpec((1, tn), lambda i, k: (0, i)),       # b1
            ],
            out_specs=pl.BlockSpec((B_pad, tn), lambda i, k: (0, i)),
            scratch_shapes=[pltpu.VMEM((B_pad, tn), jnp.float32)]),
        compiler_params=pltpu.CompilerParams(
            dimension_semantics=("parallel", "arbitrary"),
            vmem_limit_bytes=vmem_limit),
        cost_estimate=cost,
    )(rep, w1, b1.reshape(1, H).astype(jnp.float32))

    # Tail layers: tiny, whole arrays resident in VMEM (gridless call).
    w3a = w3[:, :H2].astype(jnp.float32)     # (1, H2)
    w3b = w3[:, H2:].astype(jnp.float32)     # (1, F)
    vmem_spec = pl.BlockSpec(memory_space=pltpu.VMEM)
    out = pl.pallas_call(
        _tail_kernel,
        out_shape=jax.ShapeDtypeStruct((B_pad, 1), jnp.float32),
        in_specs=[vmem_spec] * 7,
        out_specs=vmem_spec,
    )(h1, fp,
      w2.astype(jnp.float32), b2.reshape(1, H2).astype(jnp.float32),
      w3a, w3b, b3.reshape(1, 1).astype(jnp.float32))

    return out[:B]


def init_params(key, seq_len, embedding_dim, protein_hidden_size,
                fingerprint_size):
    """Deterministic parameter init mimicking nn.Linear shapes: W is (out, in)."""
    k1, k2, k3, k4, k5, k6 = jax.random.split(key, 6)
    d_in1 = seq_len * embedding_dim
    h = protein_hidden_size
    h2 = protein_hidden_size // 2
    d_in3 = h2 + fingerprint_size
    return {
        "w1": jax.random.normal(k1, (h, d_in1), jnp.float32) * (1.0 / jnp.sqrt(d_in1)),
        "b1": jax.random.normal(k2, (h,), jnp.float32) * 0.01,
        "w2": jax.random.normal(k3, (h2, h), jnp.float32) * (1.0 / jnp.sqrt(h)),
        "b2": jax.random.normal(k4, (h2,), jnp.float32) * 0.01,
        "w3": jax.random.normal(k5, (1, d_in3), jnp.float32) * (1.0 / jnp.sqrt(d_in3)),
        "b3": jax.random.normal(k6, (1,), jnp.float32) * 0.01,
    }


def _reference(last_hidden_state, fp, params):
    B = last_hidden_state.shape[0]
    rep = last_hidden_state.reshape(B, -1)
    h1 = jax.nn.relu(rep @ params["w1"].astype(jnp.float32).T + params["b1"])
    h2 = jax.nn.relu(h1 @ params["w2"].T + params["b2"])
    combined = jnp.concatenate([h2, fp], axis=1)
    return combined @ params["w3"].T + params["b3"]


if __name__ == "__main__":
    # Small shapes consistent with the module's forward:
    # (seq_len, embedding_dim) stand in for ESM's (1024-2, 320);
    # protein_hidden_size and fingerprint_size scaled down.
    B, S, E = 2, 8, 32
    H, F = 64, 128

    key = jax.random.PRNGKey(0)
    k_lhs, k_fp, k_par = jax.random.split(key, 3)

    last_hidden_state = jax.random.normal(k_lhs, (B, S, E), jnp.float32)
    morgan_fingerprint = (jax.random.uniform(k_fp, (B, F)) > 0.5).astype(jnp.float32)
    params = init_params(k_par, S, E, H, F)

    ref = _reference(last_hidden_state, morgan_fingerprint, params)

    # f32 weights: strict check.
    out = esm2_regressor_head(last_hidden_state, morgan_fingerprint, params)
    out = jax.block_until_ready(out)
    assert out.shape == (B, 1), out.shape
    assert jnp.allclose(out, ref, atol=1e-4, rtol=1e-4), (out, ref)

    # bf16 W1 (cast once at "load time"): loose check against the f32 reference.
    params_bf16 = prepare_params(params, jnp.bfloat16)
    out_bf16 = esm2_regressor_head(last_hidden_state, morgan_fingerprint,
                                   params_bf16)
    out_bf16 = jax.block_until_ready(out_bf16)
    assert out_bf16.shape == (B, 1), out_bf16.shape
    assert jnp.allclose(out_bf16, ref, atol=1e-1, rtol=1e-1), (out_bf16, ref)

    print("KERNEL_OK")
</pallas_src>

<mosaic_0001>
module attributes {stable_mosaic.version = 11 : i64} {
  func.func @_fc1_kernel(%arg0: i32, %arg1: i32, %arg2: memref<8x256xf32, #tpu.memory_space<vmem>>, %arg3: memref<64x256xf32, #tpu.memory_space<vmem>>, %arg4: memref<1x64xf32, #tpu.memory_space<vmem>>, %arg5: memref<8x64xf32, #tpu.memory_space<vmem>>, %arg6: memref<8x64xf32, #tpu.memory_space<vmem>>) attributes {dimension_semantics = [#tpu.dimension_semantics<parallel>, #tpu.dimension_semantics<arbitrary>], iteration_bounds = array<i64: 1, 1>, scalar_prefetch = 0 : i64, scratch_operands = 1 : i64, tpu.core_type = #tpu.core_type<tc>, window_params = [{transform_indices = @transform_0, window_bounds = array<i64: 8, 256>}, {transform_indices = @transform_1, window_bounds = array<i64: 64, 256>}, {transform_indices = @transform_2, window_bounds = array<i64: 1, 64>}, {transform_indices = @transform_3, window_bounds = array<i64: 8, 64>}]} {
    %c0_i32 = arith.constant 0 : i32
    %0 = arith.cmpi eq, %arg1, %c0_i32 : i32
    %1 = arith.extui %0 : i1 to i32
    %c0_i32_0 = arith.constant 0 : i32
    %2 = arith.cmpi ne, %1, %c0_i32_0 : i32
    scf.if %2 {
      %cst_10 = arith.constant 0.000000e+00 : f32
      %12 = vector.broadcast %cst_10 : f32 to vector<8x64xf32>
      %c0_11 = arith.constant 0 : index
      %c0_12 = arith.constant 0 : index
      %13 = vector.load %arg6[%c0_11, %c0_12] : memref<8x64xf32, #tpu.memory_space<vmem>>, vector<8x64xf32>
      tpu.vector_store %arg6[%c0_11, %c0_12], %12 {strides = array<i32>} : memref<8x64xf32, #tpu.memory_space<vmem>>, vector<8x64xf32>,
    } else {
    }
    %c0 = arith.constant 0 : index
    %c0_1 = arith.constant 0 : index
    %3 = vector.load %arg6[%c0, %c0_1] : memref<8x64xf32, #tpu.memory_space<vmem>>, vector<8x64xf32>
    %c0_2 = arith.constant 0 : index
    %c0_3 = arith.constant 0 : index
    %4 = vector.load %arg2[%c0_2, %c0_3] : memref<8x256xf32, #tpu.memory_space<vmem>>, vector<8x256xf32>
    %c0_4 = arith.constant 0 : index
    %c0_5 = arith.constant 0 : index
    %5 = vector.load %arg3[%c0_4, %c0_5] : memref<64x256xf32, #tpu.memory_space<vmem>>, vector<64x256xf32>
    %cst = arith.constant dense<0.000000e+00> : vector<8x64xf32>
    %6 = tpu.matmul %4, %5, %cst {dimension_numbers = #tpu.dot_dimension_numbers<[1], [1], [0], [0], [0, 0, 1, 0], [], []>} : vector<8x256xf32>, vector<64x256xf32>, vector<8x64xf32> -> vector<8x64xf32>
    %7 = arith.addf %3, %6 : vector<8x64xf32>
    %c0_6 = arith.constant 0 : index
    %c0_7 = arith.constant 0 : index
    %8 = vector.load %arg6[%c0_6, %c0_7] : memref<8x64xf32, #tpu.memory_space<vmem>>, vector<8x64xf32>
    tpu.vector_store %arg6[%c0_6, %c0_7], %7 {strides = array<i32>} : memref<8x64xf32, #tpu.memory_space<vmem>>, vector<8x64xf32>,
    %c0_i32_8 = arith.constant 0 : i32
    %9 = arith.cmpi eq, %arg1, %c0_i32_8 : i32
    %10 = arith.extui %9 : i1 to i32
    %c0_i32_9 = arith.constant 0 : i32
    %11 = arith.cmpi ne, %10, %c0_i32_9 : i32
    scf.if %11 {
      %c0_10 = arith.constant 0 : index
      %c0_11 = arith.constant 0 : index
      %12 = vector.load %arg6[%c0_10, %c0_11] : memref<8x64xf32, #tpu.memory_space<vmem>>, vector<8x64xf32>
      %c0_12 = arith.constant 0 : index
      %c0_13 = arith.constant 0 : index
      %13 = vector.load %arg4[%c0_12, %c0_13] : memref<1x64xf32, #tpu.memory_space<vmem>>, vector<1x64xf32>
      %14 = vector.broadcast %13 : vector<1x64xf32> to vector<8x64xf32>
      %15 = arith.addf %12, %14 : vector<8x64xf32>
      %cst_14 = arith.constant 0.000000e+00 : f32
      %16 = vector.broadcast %cst_14 : f32 to vector<8x64xf32>
      %17 = arith.maximumf %15, %16 : vector<8x64xf32>
      %c0_15 = arith.constant 0 : index
      %c0_16 = arith.constant 0 : index
      %18 = vector.load %arg5[%c0_15, %c0_16] : memref<8x64xf32, #tpu.memory_space<vmem>>, vector<8x64xf32>
      tpu.vector_store %arg5[%c0_15, %c0_16], %17 {strides = array<i32>} : memref<8x64xf32, #tpu.memory_space<vmem>>, vector<8x64xf32>,
    } else {
    }
    return
  }
  func.func @transform_0(%arg0: i32, %arg1: i32) -> (i32, i32) {
    %c0_i32 = arith.constant 0 : i32
    %c0_i32_0 = arith.constant 0 : i32
    return %c0_i32, %arg1 : i32, i32
  }
  func.func @transform_1(%arg0: i32, %arg1: i32) -> (i32, i32) {
    %c0_i32 = arith.constant 0 : i32
    return %arg0, %arg1 : i32, i32
  }
  func.func @transform_2(%arg0: i32, %arg1: i32) -> (i32, i32) {
    %c0_i32 = arith.constant 0 : i32
    %c0_i32_0 = arith.constant 0 : i32
    return %c0_i32, %arg0 : i32, i32
  }
  func.func @transform_3(%arg0: i32, %arg1: i32) -> (i32, i32) {
    %c0_i32 = arith.constant 0 : i32
    %c0_i32_0 = arith.constant 0 : i32
    return %c0_i32, %arg0 : i32, i32
  }
}

</mosaic_0001>

<bundles_post_ra>
// kernel: tpu_custom_call.1
= control target key start
LH: loop header
LB: loop body
LE: loop exit
PB: predicated region body
PF: predicated region fallthrough
CT: control target
= control target key end

     0   :  { %8 = vsyncpa [#allocation4], 0  ;;  %s268_s0 = inlined_call_operand.hbm [shape: f32[8,256], index: 0, kind: input, shape index: {}]   ;;  %s269_s1 = inlined_call_operand.hbm [shape: f32[64,256], index: 1, kind: input, shape index: {}]   ;;  %s270_s2 = inlined_call_operand.vmem [shape: f32[1,64], index: 2, kind: input, shape index: {}]   ;;  %s271_s3 = inlined_call_operand.hbm [shape: f32[8,64], index: 3, kind: output, shape index: {}]  }
   0x1   :  { %9 = vsyncpa [#allocation7], 0 }
   0x2   :  { %10 = vsyncpa [#allocation5], 0  ;;  %s16_s14 = sshll.u32 %s268_s0, 4  ;;  %s227_s15 = smov [#allocation3]   ;;  %s17_s14 = int_to_ptr.hbm [resolvable:$true] %s16_s14 }
   0x3   :  { %s18_s16 = sshll.u32 %s227_s15, 4  ;;  %s26_s19 = sshll.u32 %s269_s1, 4  ;;  %s19_s16 = int_to_ptr.vmem [resolvable:$true] %s18_s16  ;;  %s27_s19 = int_to_ptr.hbm [resolvable:$true] %s26_s19 }
   0x4   :  { %21 = dma.hbm_to_vmem [thread:$0]  %s17_s14, 256, %s19_s16, [#allocation4]  }
   0x5   :  { %s228_s20 = smov [#allocation6]   ;;  %s229_s22 = smov 256  }
   0x6   :  { %s28_s21 = sshll.u32 %s228_s20, 4  ;;  %s230_s23 = smov 16   ;;  %s29_s21 = int_to_ptr.vmem [resolvable:$true] %s28_s21 }
   0x7   :  { %34 = dma.hbm_to_vmem [thread:$0]  %s27_s19, 2048, %s29_s21, [#allocation7], %s229_s22, %s229_s22, %s230_s23  }
   0x8   :  { %221 = dma.done.wait [#allocation4], 256  }
   0x9   :  { %222 = vsyncadd [#allocation4], 4294967040 }
   0xa   :  { %223 = dma.done.wait [#allocation7], 2048  }
   0xb   :  { %224 = vsyncadd [#allocation7], 4294965248  ;;  %v68_v0 = vld [vmem:[#allocation6 + $0x70] sm:$0xff]  ;;  %v69_v1 = vld [vmem:[#allocation6 + $0x78] sm:$0xff]  ;;  %vm49_vm0 = vcmask 523264   ;;  %v231_v18 = vmov 0.0  }
   0xc   :  { %78 = vmatpush.xpose.msra.mxu0 %v68_v0  ;;  %98 = vmatpush.xpose.msra.mxu1 %v69_v1  ;;  %v66_v2 = vld [vmem:[#allocation6 + $0x60] sm:$0xff]  ;;  %v67_v3 = vld [vmem:[#allocation6 + $0x68] sm:$0xff]  ;;  %v64_v4 = vld [vmem:[#allocation6 + $0x50] sm:$0xff]  ;;  %50 = vst.msk [vmem:[#allocation2] sm:$0xff] %vm49_vm0, %v231_v18  ;;  %s232_s24 = smov [#allocation8]   ;;  %s131_s28 = sshll.u32 %s271_s3, 4  ;;  %s132_s28 = int_to_ptr.hbm [resolvable:$true] %s131_s28 }
   0xd   :  { %v65_v5 = vld [vmem:[#allocation6 + $0x58] sm:$0xff]  ;;  %v62_v6 = vld [vmem:[#allocation6 + $0x40] sm:$0xff]  ;;  %v63_v7 = vld [vmem:[#allocation6 + $0x48] sm:$0xff]  ;;  %s129_s25 = sshll.u32 %s232_s24, 4  ;;  %s130_s25 = int_to_ptr.vmem [resolvable:$true] %s129_s25 }
   0xe   :  { %v60_v8 = vld [vmem:[#allocation6 + $0x30] sm:$0xff]  ;;  %v61_v9 = vld [vmem:[#allocation6 + $0x38] sm:$0xff]  ;;  %v58_v10 = vld [vmem:[#allocation6 + $0x20] sm:$0xff] }
   0xf   :  { %v59_v11 = vld [vmem:[#allocation6 + $0x28] sm:$0xff]  ;;  %v56_v12 = vld [vmem:[#allocation6 + $0x10] sm:$0xff]  ;;  %v57_v13 = vld [vmem:[#allocation6 + $0x18] sm:$0xff] }
  0x10   :  { %79 = vmatpush.xpose.msra.mxu0 %v66_v2  ;;  %99 = vmatpush.xpose.msra.mxu1 %v67_v3  ;;  %v54_v14 = vld [vmem:[#allocation6] sm:$0xff]  ;;  %v55_v15 = vld [vmem:[#allocation6 + $0x8] sm:$0xff]  ;;  %v52_v16 = vld [vmem:[#allocation3] sm:$0xff] }
  0x11   :  { %v53_v17 = vld [vmem:[#allocation3 + $0x8] sm:$0xff]  ;;  %v148_v24 = vld [vmem:[%s270_s2] ss:$0 sm:$0xff] }
  0x13   :  { %v51_v20 = vld [vmem:[#allocation2] sm:$0xff] }
  0x14   :  { %80 = vmatpush.xpose.msra.mxu0 %v64_v4  ;;  %100 = vmatpush.xpose.msra.mxu1 %v65_v5 }
  0x18   :  { %81 = vmatpush.xpose.msra.mxu0 %v62_v6  ;;  %101 = vmatpush.xpose.msra.mxu1 %v63_v7 }
  0x1c   :  { %82 = vmatpush.xpose.msra.mxu0 %v60_v8  ;;  %102 = vmatpush.xpose.msra.mxu1 %v61_v9 }
  0x20   :  { %83 = vmatpush.xpose.msra.mxu0 %v58_v10  ;;  %103 = vmatpush.xpose.msra.mxu1 %v59_v11 }
  0x24   :  { %84 = vmatpush.xpose.msra.mxu0 %v56_v12  ;;  %104 = vmatpush.xpose.msra.mxu1 %v57_v13 }
  0x28   :  { %85 = vmatpush.xpose.msra.mxu0 %v54_v14  ;;  %105 = vmatpush.xpose.msra.mxu1 %v55_v15 }
  0x2b   :  { %86 = vmatmul.f32.vlgmr.msra.gmra.mxu0 %v52_v16  ;;  %106 = vmatmul.f32.vlgmr.msra.gmra.mxu1 %v53_v17 }
  0xa8   :  { %v87_v19 = vpop.f32.mrf.mxu0  ;;  %v107_v21 = vpop.f32.mrf.mxu1 }
  0xa9   :  { %v108_v22 = vadd.f32 %v107_v21, %v87_v19 }
  0xab   :  { %v110_v23 = vadd.f32 %v108_v22, %v51_v20 }
  0xad   :  { %112 = vst.msk [vmem:[#allocation2] sm:$0xff] %vm49_vm0, %v110_v23 }
  0xb4   :  { %v116_v25 = vld [vmem:[#allocation2] sm:$0xff] }
  0xb5   :  { %v121_v26 = vadd.f32 %v148_v24, %v116_v25 }
  0xb7   :  { %v122_v27 = vmax.f32 %v121_v26, 0.0 }
  0xb9   :  { %123 = vst.msk [vmem:[#allocation8] sm:$0xff] %vm49_vm0, %v122_v27 }
  0xba   :  { %134 = dma.vmem_to_hbm [thread:$0]  %s130_s25, 128, %s132_s28, [#allocation5]  }
  0xbb   :  { %225 = dma.done.wait [#allocation5], 128  }
  0xbc   :  { %226 = vsyncadd [#allocation5], 4294967168 }
  0xbd   :  { %139 = vsyncpa [#allocation4], 1 }
  0xbe   :  { %140 = vsyncpa [#allocation7], 1 }
  0xbf   :  { %141 = vsyncpa [#allocation5], 1 }

</bundles_post_ra>
